<compile_context>
chip_gen: v6e
topology: v6e:2x2x1
jax: 0.10.0
libtpu: 0.0.40
codegen_flags: <defaults>
</compile_context>

<pallas_src>
import functools

import jax
import jax.numpy as jnp
from jax.experimental import pallas as pl
from jax.experimental.pallas import tpu as pltpu


def _round_up(v, m):
    return (v + m - 1) // m * m


def _pad2(a, rows, cols):
    r, c = a.shape
    if r == rows and c == cols:
        return a
    return jnp.pad(a, ((0, rows - r), (0, cols - c)))


def _vmem_cap_bytes():
    """Usable per-kernel VMEM budget (generation aware; conservative fallback)."""
    try:
        info = pltpu.get_tpu_info()
        cap = getattr(info, "vmem_capacity_bytes", None)
        if cap:
            # 75% of physical: up to 96 MiB on v5e/v6e (128 MiB), 48 MiB on v7x (64 MiB).
            return int(min(max(int(cap) * 3 // 4, 16 << 20), 96 << 20))
    except Exception:
        pass
    return 48 << 20  # safe everywhere (fits v7x's 64 MiB physical)


# ----------------------------- kernels -----------------------------


def _fused_kernel(x_ref, adj_ref, w1_ref, w2_ref, wrec_ref,
                  hidden_ref, adjrec_ref, *, cd):
    """Whole forward for small graphs: everything VMEM-resident, one launch."""
    adj = adj_ref[...].astype(cd)
    xw1 = jnp.dot(x_ref[...].astype(cd), w1_ref[...].astype(cd),
                  preferred_element_type=jnp.float32)
    h1 = jnp.maximum(
        jnp.dot(adj, xw1.astype(cd), preferred_element_type=jnp.float32), 0.0)
    s2 = jnp.dot(h1.astype(cd), w2_ref[...].astype(cd),
                 preferred_element_type=jnp.float32)
    h2 = jnp.dot(adj, s2.astype(cd), preferred_element_type=jnp.float32) + h1
    hidden_ref[...] = h2.astype(hidden_ref.dtype)
    adjrec_ref[...] = jnp.dot(
        h2.astype(cd), wrec_ref[...].astype(cd),
        preferred_element_type=jnp.float32).astype(adjrec_ref.dtype)


def _feature_transform_kernel(x_ref, w1_ref, out_ref, *, cd):
    # xw1 = x @ W1 : row tile of nodes, W1 resident in VMEM (constant block index).
    out_ref[...] = jnp.dot(
        x_ref[...].astype(cd), w1_ref[...].astype(cd),
        preferred_element_type=jnp.float32).astype(out_ref.dtype)


def _gc1_kernel(adj_ref, xw_ref, w2_ref, h1_ref, s2_ref, acc_ref,
                *, cd, tk, resident):
    # h1 = relu(adj @ xw1) ; s2 = h1 @ W2   (dense layer fused into K-loop finalize)
    k = pl.program_id(1)
    if resident:
        start = pl.multiple_of(k * tk, tk)
        xw = xw_ref[pl.ds(start, tk), :]
    else:
        xw = xw_ref[...]
    prod = jnp.dot(adj_ref[...].astype(cd), xw.astype(cd),
                   preferred_element_type=jnp.float32)

    @pl.when(k == 0)
    def _():
        acc_ref[...] = prod            # first partial product: no zero-fill pass

    @pl.when(k != 0)
    def _():
        acc_ref[...] += prod

    @pl.when(k == pl.num_programs(1) - 1)
    def _():
        h1 = jnp.maximum(acc_ref[...], 0.0)
        h1_ref[...] = h1.astype(h1_ref.dtype)
        s2_ref[...] = jnp.dot(
            h1.astype(cd), w2_ref[...].astype(cd),
            preferred_element_type=jnp.float32).astype(s2_ref.dtype)


def _gc2_kernel(adj_ref, s2_ref, h1_ref, wrec_ref, hidden_ref, adjrec_ref, acc_ref,
                *, cd, tk, resident):
    # h2 = adj @ s2 + h1 ; adj_rec = h2 @ W_rec   (residual + decoder fused in finalize)
    k = pl.program_id(1)
    if resident:
        start = pl.multiple_of(k * tk, tk)
        s2 = s2_ref[pl.ds(start, tk), :]
    else:
        s2 = s2_ref[...]
    prod = jnp.dot(adj_ref[...].astype(cd), s2.astype(cd),
                   preferred_element_type=jnp.float32)

    @pl.when(k == 0)
    def _():
        acc_ref[...] = prod

    @pl.when(k != 0)
    def _():
        acc_ref[...] += prod

    @pl.when(k == pl.num_programs(1) - 1)
    def _():
        h2 = acc_ref[...] + h1_ref[...].astype(jnp.float32)
        hidden_ref[...] = h2.astype(hidden_ref.dtype)
        adjrec_ref[...] = jnp.dot(
            h2.astype(cd), wrec_ref[...].astype(cd),
            preferred_element_type=jnp.float32).astype(adjrec_ref.dtype)


# ----------------------------- wrapper -----------------------------


def gcn_model_ae_residual(x, adj, w1, w2, w_rec, *,
                          compute_dtype=jnp.bfloat16,
                          fuse=None, tile=None, resident_activations=None):
    """Fused GAE-residual forward. Returns (adj_recovered, hidden), both f32.

    compute_dtype: dtype of the MXU operands (accumulation/relu/residual stay f32).
    Inputs are streamed in their native dtype and cast per tile in-kernel, so no
    extra full-array pad/cast HBM pass is performed; for maximum bandwidth on big
    graphs pass adj pre-cast to `compute_dtype` (and pre-padded to the tile size).
    fuse / tile / resident_activations override the automatic plan (mainly tests).
    """
    N, D = x.shape
    H1, H2 = w1.shape[1], w2.shape[1]
    assert H1 == H2, "residual connection requires hidden_dim1 == hidden_dim2"
    assert w1.shape[0] == D and w2.shape[0] == H1 and w_rec.shape == (H2, D)
    assert adj.shape == (N, N)
    H = H1

    cd = jnp.dtype(compute_dtype)
    cds = cd.itemsize
    adj_bytes = adj.dtype.itemsize

    Dp = _round_up(D, 128)   # lane-dense feature dims
    Hp = _round_up(H, 128)
    cap = _vmem_cap_bytes()

    # ------------------ fused single-launch path (small graphs) ------------------
    Nf = _round_up(N, 128)
    fused_vmem = int(1.3 * (
        2 * Nf * Nf * adj_bytes                               # adj buffer(s)
        + (Nf * Nf * cds if adj_bytes != cds else 0)          # in-kernel cast copy
        + 2 * Nf * Dp * x.dtype.itemsize                      # x buffer(s)
        + 2 * (Dp * Hp + Hp * Hp + Hp * Dp) * 4               # weights
        + 6 * Nf * Hp * 4                                     # xw1/h1/s2/h2 + temps
        + 2 * Nf * (Hp + Dp) * 4))                            # outputs
    if fuse is None:
        fuse = (Nf <= 2048) and (fused_vmem <= cap)

    if fuse:
        x_p = _pad2(x, Nf, Dp)
        adj_p = _pad2(adj, Nf, Nf)
        w1_p = _pad2(w1, Dp, Hp)
        w2_p = _pad2(w2, Hp, Hp)
        wrec_p = _pad2(w_rec, Hp, Dp)

        hidden_p, adjrec_p = pl.pallas_call(
            functools.partial(_fused_kernel, cd=cd),
            out_shape=(jax.ShapeDtypeStruct((Nf, Hp), jnp.float32),
                       jax.ShapeDtypeStruct((Nf, Dp), jnp.float32)),
            grid=(1,),
            in_specs=[
                pl.BlockSpec((Nf, Dp), lambda i: (0, 0)),
                pl.BlockSpec((Nf, Nf), lambda i: (0, 0)),
                pl.BlockSpec((Dp, Hp), lambda i: (0, 0)),
                pl.BlockSpec((Hp, Hp), lambda i: (0, 0)),
                pl.BlockSpec((Hp, Dp), lambda i: (0, 0)),
            ],
            out_specs=(
                pl.BlockSpec((Nf, Hp), lambda i: (0, 0)),
                pl.BlockSpec((Nf, Dp), lambda i: (0, 0)),
            ),
            compiler_params=pltpu.CompilerParams(
                dimension_semantics=("arbitrary",),
                vmem_limit_bytes=min(max(fused_vmem, 4 << 20), cap)),
            cost_estimate=pl.CostEstimate(
                flops=int(4 * Nf * Nf * Hp + 2 * Nf * Dp * Hp
                          + 2 * Nf * Hp * Hp + 2 * Nf * Hp * Dp),
                transcendentals=0,
                bytes_accessed=int(Nf * Nf * adj_bytes
                                   + Nf * Dp * x.dtype.itemsize
                                   + (Dp * Hp + Hp * Hp + Hp * Dp) * 4
                                   + Nf * (Hp + Dp) * 4)),
        )(x_p, adj_p, w1_p, w2_p, wrec_p)
        return adjrec_p[:N, :D], hidden_p[:N, :H]

    # ------------------------- tiled / pipelined path -------------------------
    def _budget(T, Np, resident):
        act = 2 * Np * Hp * cds if resident else 2 * T * Hp * cds
        common = 2 * T * T * adj_bytes + act + T * Hp * 4      # adj dbuf + act + acc
        s0 = 2 * T * Dp * 4 + Dp * Hp * 4 + 2 * T * Hp * cds
        sa = common + Hp * Hp * 4 + 2 * T * Hp * 4 + 2 * T * Hp * cds
        sb = common + Hp * Dp * 4 + 2 * T * Hp * 4 + 2 * T * (Hp + Dp) * 4
        return int(1.4 * max(s0, sa, sb))

    tiles = (int(tile),) if tile is not None else (1024, 512)
    res_opts = ((bool(resident_activations),) if resident_activations is not None
                else (True, False))
    plan = None
    for T in tiles:
        Np = _round_up(N, T)
        if tile is None and Np // T < 2:
            continue          # keep >= 2 row tiles so the v7x megacore shards the grid
        for res in res_opts:
            b = _budget(T, Np, res)
            if b <= cap:
                plan = (T, Np, res, b)
                break
        if plan is not None:
            break
    if plan is None:          # fallback: smallest candidate tile, streamed activations
        T = tiles[-1]
        Np = _round_up(N, T)
        plan = (T, Np, False, _budget(T, Np, False))
    T, Np, resident, vmem_req = plan
    tm = tk = T
    vmem_bytes = min(max(vmem_req, 4 << 20), cap)

    # Zero padding keeps the math identical (padded adj rows/cols and weight
    # rows/cols are zero -> padded outputs are zero, sliced off below).  _pad2 is
    # a no-op when the caller already passes padded arrays.
    x_p = _pad2(x, Np, Dp)
    adj_p = _pad2(adj, Np, Np)
    w1_p = _pad2(w1, Dp, Hp)
    w2_p = _pad2(w2, Hp, Hp)
    wrec_p = _pad2(w_rec, Hp, Dp)

    cp_rows = pltpu.CompilerParams(
        dimension_semantics=("parallel",), vmem_limit_bytes=vmem_bytes)
    cp_tiled = pltpu.CompilerParams(
        dimension_semantics=("parallel", "arbitrary"), vmem_limit_bytes=vmem_bytes)

    # ---- stage 0: xw1 = x @ W1 (W1 resident) ----
    xw1 = pl.pallas_call(
        functools.partial(_feature_transform_kernel, cd=cd),
        out_shape=jax.ShapeDtypeStruct((Np, Hp), cd),
        grid=(Np // tm,),
        in_specs=[
            pl.BlockSpec((tm, Dp), lambda i: (i, 0)),
            pl.BlockSpec((Dp, Hp), lambda i: (0, 0)),
        ],
        out_specs=pl.BlockSpec((tm, Hp), lambda i: (i, 0)),
        compiler_params=cp_rows,
        cost_estimate=pl.CostEstimate(
            flops=int(2 * Np * Dp * Hp), transcendentals=0,
            bytes_accessed=int(Np * Dp * x.dtype.itemsize + Dp * Hp * 4
                               + Np * Hp * cds)),
    )(x_p, w1_p)

    if resident:
        act_spec = pl.BlockSpec((Np, Hp), lambda i, k: (0, 0))   # read once, resident
    else:
        act_spec = pl.BlockSpec((tk, Hp), lambda i, k: (k, 0))   # streamed K tile

    # ---- stage A: h1 = relu(adj @ xw1); s2 = h1 @ W2 ----
    h1, s2 = pl.pallas_call(
        functools.partial(_gc1_kernel, cd=cd, tk=tk, resident=resident),
        out_shape=(
            jax.ShapeDtypeStruct((Np, Hp), jnp.float32),   # h1 (residual, f32)
            jax.ShapeDtypeStruct((Np, Hp), cd),            # s2 = h1 @ W2
        ),
        grid=(Np // tm, Np // tk),
        in_specs=[
            pl.BlockSpec((tm, tk), lambda i, k: (i, k)),   # adj row/K tile
            act_spec,                                      # xw1
            pl.BlockSpec((Hp, Hp), lambda i, k: (0, 0)),   # W2 resident
        ],
        out_specs=(
            pl.BlockSpec((tm, Hp), lambda i, k: (i, 0)),
            pl.BlockSpec((tm, Hp), lambda i, k: (i, 0)),
        ),
        scratch_shapes=[pltpu.VMEM((tm, Hp), jnp.float32)],
        compiler_params=cp_tiled,
        cost_estimate=pl.CostEstimate(
            flops=int(2 * Np * Np * Hp + 2 * Np * Hp * Hp),
            transcendentals=0,
            bytes_accessed=int(Np * Np * adj_bytes + Np * Hp * cds
                               + Hp * Hp * 4 + Np * Hp * (4 + cds))),
    )(adj_p, xw1, w2_p)

    # ---- stage B: h2 = adj @ s2 + h1; adj_rec = h2 @ W_rec ----
    hidden_p, adjrec_p = pl.pallas_call(
        functools.partial(_gc2_kernel, cd=cd, tk=tk, resident=resident),
        out_shape=(
            jax.ShapeDtypeStruct((Np, Hp), jnp.float32),   # hidden
            jax.ShapeDtypeStruct((Np, Dp), jnp.float32),   # adj_recovered
        ),
        grid=(Np // tm, Np // tk),
        in_specs=[
            pl.BlockSpec((tm, tk), lambda i, k: (i, k)),   # adj row/K tile
            act_spec,                                      # s2
            pl.BlockSpec((tm, Hp), lambda i, k: (i, 0)),   # h1 residual row tile
            pl.BlockSpec((Hp, Dp), lambda i, k: (0, 0)),   # W_rec resident
        ],
        out_specs=(
            pl.BlockSpec((tm, Hp), lambda i, k: (i, 0)),
            pl.BlockSpec((tm, Dp), lambda i, k: (i, 0)),
        ),
        scratch_shapes=[pltpu.VMEM((tm, Hp), jnp.float32)],
        compiler_params=cp_tiled,
        cost_estimate=pl.CostEstimate(
            flops=int(2 * Np * Np * Hp + 2 * Np * Hp * Dp),
            transcendentals=0,
            bytes_accessed=int(Np * Np * adj_bytes + Np * Hp * cds + Np * Hp * 4
                               + Hp * Dp * 4 + Np * Hp * 4 + Np * Dp * 4)),
    )(adj_p, s2, h1, wrec_p)

    return adjrec_p[:N, :D], hidden_p[:N, :H]


# ----------------------------- reference / demo -----------------------------


def _reference(x, adj, w1, w2, w_rec):
    h1 = jnp.maximum(adj @ (x @ w1), 0.0)
    h2 = adj @ (h1 @ w2) + h1
    return h2 @ w_rec, h2


def _make_norm_adj(key, n):
    # Deterministic symmetric normalized adjacency with self-loops:
    #   A_hat = D^{-1/2} (A + I) D^{-1/2}
    a = (jax.random.uniform(key, (n, n)) < 0.1).astype(jnp.float32)
    a = jnp.maximum(a, a.T) + jnp.eye(n, dtype=jnp.float32)
    d_inv_sqrt = 1.0 / jnp.sqrt(jnp.sum(a, axis=1))
    return a * d_inv_sqrt[:, None] * d_inv_sqrt[None, :]


if __name__ == "__main__":
    # Small synthetic problem: N nodes, input_feat_dim=D, hidden_dim1=hidden_dim2=H.
    N, D, H = 64, 32, 32
    key = jax.random.PRNGKey(0)
    k_x, k_a, k_w1, k_w2, k_wr, k_x2, k_a2 = jax.random.split(key, 7)

    x = jax.random.normal(k_x, (N, D), dtype=jnp.float32)
    adj = _make_norm_adj(k_a, N)

    # Parameter shapes per the module: gc1 (D,H), gc2 (H,H), adj_recovered_weight (H,D).
    w1 = jax.random.normal(k_w1, (D, H), dtype=jnp.float32) * jnp.sqrt(2.0 / (D + H))
    w2 = jax.random.normal(k_w2, (H, H), dtype=jnp.float32) * jnp.sqrt(2.0 / (H + H))
    w_rec = jax.random.normal(k_wr, (H, D), dtype=jnp.float32) * jnp.sqrt(2.0 / H)

    ref_adj_rec, ref_hidden = _reference(x, adj, w1, w2, w_rec)

    # 1) f32 fused path (exact check).
    adj_rec, hidden = gcn_model_ae_residual(
        x, adj, w1, w2, w_rec, compute_dtype=jnp.float32)
    jax.block_until_ready((adj_rec, hidden))
    assert adj_rec.shape == (N, D) and hidden.shape == (N, H)
    assert jnp.allclose(adj_rec, ref_adj_rec, atol=1e-3, rtol=1e-3)
    assert jnp.allclose(hidden, ref_hidden, atol=1e-3, rtol=1e-3)

    # 2) default bf16-operand fused path (loose mixed-precision tolerance).
    adj_rec_bf, hidden_bf = gcn_model_ae_residual(x, adj, w1, w2, w_rec)
    jax.block_until_ready((adj_rec_bf, hidden_bf))

    def _rel(a, b):
        return float(jnp.max(jnp.abs(a - b)) / (jnp.max(jnp.abs(b)) + 1e-6))

    assert _rel(adj_rec_bf, ref_adj_rec) < 5e-2
    assert _rel(hidden_bf, ref_hidden) < 5e-2

    # 3/4) forced tiled/pipelined path, exercising both the VMEM-resident and the
    #      streamed-activation variants (f32 for an exact check).
    N2 = 256
    x2 = jax.random.normal(k_x2, (N2, D), dtype=jnp.float32)
    adj2 = _make_norm_adj(k_a2, N2)
    ref_adj_rec2, ref_hidden2 = _reference(x2, adj2, w1, w2, w_rec)
    for res in (True, False):
        ar, hd = gcn_model_ae_residual(
            x2, adj2, w1, w2, w_rec, compute_dtype=jnp.float32,
            fuse=False, tile=128, resident_activations=res)
        jax.block_until_ready((ar, hd))
        assert jnp.allclose(ar, ref_adj_rec2, atol=1e-3, rtol=1e-3)
        assert jnp.allclose(hd, ref_hidden2, atol=1e-3, rtol=1e-3)

    print("KERNEL_OK")
</pallas_src>

<mosaic_0001>
module attributes {stable_mosaic.version = 11 : i64} {
  func.func @_fused_kernel(%arg0: i32, %arg1: memref<128x128xf32, #tpu.memory_space<vmem>>, %arg2: memref<128x128xf32, #tpu.memory_space<vmem>>, %arg3: memref<128x128xf32, #tpu.memory_space<vmem>>, %arg4: memref<128x128xf32, #tpu.memory_space<vmem>>, %arg5: memref<128x128xf32, #tpu.memory_space<vmem>>, %arg6: memref<128x128xf32, #tpu.memory_space<vmem>>, %arg7: memref<128x128xf32, #tpu.memory_space<vmem>>) attributes {dimension_semantics = [#tpu.dimension_semantics<arbitrary>], iteration_bounds = array<i64: 1>, scalar_prefetch = 0 : i64, scratch_operands = 0 : i64, tpu.core_type = #tpu.core_type<tc>, window_params = [{pipeline_mode = #tpu.pipeline_mode<synchronous>, transform_indices = @transform_0, window_bounds = array<i64: 128, 128>}, {pipeline_mode = #tpu.pipeline_mode<synchronous>, transform_indices = @transform_1, window_bounds = array<i64: 128, 128>}, {pipeline_mode = #tpu.pipeline_mode<synchronous>, transform_indices = @transform_2, window_bounds = array<i64: 128, 128>}, {pipeline_mode = #tpu.pipeline_mode<synchronous>, transform_indices = @transform_3, window_bounds = array<i64: 128, 128>}, {pipeline_mode = #tpu.pipeline_mode<synchronous>, transform_indices = @transform_4, window_bounds = array<i64: 128, 128>}, {pipeline_mode = #tpu.pipeline_mode<synchronous>, transform_indices = @transform_5, window_bounds = array<i64: 128, 128>}, {pipeline_mode = #tpu.pipeline_mode<synchronous>, transform_indices = @transform_6, window_bounds = array<i64: 128, 128>}]} {
    %c0 = arith.constant 0 : index
    %c0_0 = arith.constant 0 : index
    %0 = vector.load %arg2[%c0, %c0_0] : memref<128x128xf32, #tpu.memory_space<vmem>>, vector<128x128xf32>
    %c0_1 = arith.constant 0 : index
    %c0_2 = arith.constant 0 : index
    %1 = vector.load %arg1[%c0_1, %c0_2] : memref<128x128xf32, #tpu.memory_space<vmem>>, vector<128x128xf32>
    %c0_3 = arith.constant 0 : index
    %c0_4 = arith.constant 0 : index
    %2 = vector.load %arg3[%c0_3, %c0_4] : memref<128x128xf32, #tpu.memory_space<vmem>>, vector<128x128xf32>
    %cst = arith.constant dense<0.000000e+00> : vector<128x128xf32>
    %3 = tpu.matmul %1, %2, %cst {dimension_numbers = #tpu.dot_dimension_numbers<[1], [0], [0], [1], [0, 0, 1, 1], [], []>} : vector<128x128xf32>, vector<128x128xf32>, vector<128x128xf32> -> vector<128x128xf32>
    %cst_5 = arith.constant dense<0.000000e+00> : vector<128x128xf32>
    %4 = tpu.matmul %0, %3, %cst_5 {dimension_numbers = #tpu.dot_dimension_numbers<[1], [0], [0], [1], [0, 0, 1, 1], [], []>} : vector<128x128xf32>, vector<128x128xf32>, vector<128x128xf32> -> vector<128x128xf32>
    %cst_6 = arith.constant 0.000000e+00 : f32
    %5 = vector.broadcast %cst_6 : f32 to vector<128x128xf32>
    %6 = arith.maximumf %4, %5 : vector<128x128xf32>
    %c0_7 = arith.constant 0 : index
    %c0_8 = arith.constant 0 : index
    %7 = vector.load %arg4[%c0_7, %c0_8] : memref<128x128xf32, #tpu.memory_space<vmem>>, vector<128x128xf32>
    %cst_9 = arith.constant dense<0.000000e+00> : vector<128x128xf32>
    %8 = tpu.matmul %6, %7, %cst_9 {dimension_numbers = #tpu.dot_dimension_numbers<[1], [0], [0], [1], [0, 0, 1, 1], [], []>} : vector<128x128xf32>, vector<128x128xf32>, vector<128x128xf32> -> vector<128x128xf32>
    %cst_10 = arith.constant dense<0.000000e+00> : vector<128x128xf32>
    %9 = tpu.matmul %0, %8, %cst_10 {dimension_numbers = #tpu.dot_dimension_numbers<[1], [0], [0], [1], [0, 0, 1, 1], [], []>} : vector<128x128xf32>, vector<128x128xf32>, vector<128x128xf32> -> vector<128x128xf32>
    %10 = arith.addf %9, %6 : vector<128x128xf32>
    %c0_11 = arith.constant 0 : index
    %c0_12 = arith.constant 0 : index
    %11 = vector.load %arg6[%c0_11, %c0_12] : memref<128x128xf32, #tpu.memory_space<vmem>>, vector<128x128xf32>
    tpu.vector_store %arg6[%c0_11, %c0_12], %10 {strides = array<i32>} : memref<128x128xf32, #tpu.memory_space<vmem>>, vector<128x128xf32>,
    %c0_13 = arith.constant 0 : index
    %c0_14 = arith.constant 0 : index
    %12 = vector.load %arg5[%c0_13, %c0_14] : memref<128x128xf32, #tpu.memory_space<vmem>>, vector<128x128xf32>
    %cst_15 = arith.constant dense<0.000000e+00> : vector<128x128xf32>
    %13 = tpu.matmul %10, %12, %cst_15 {dimension_numbers = #tpu.dot_dimension_numbers<[1], [0], [0], [1], [0, 0, 1, 1], [], []>} : vector<128x128xf32>, vector<128x128xf32>, vector<128x128xf32> -> vector<128x128xf32>
    %c0_16 = arith.constant 0 : index
    %c0_17 = arith.constant 0 : index
    %14 = vector.load %arg7[%c0_16, %c0_17] : memref<128x128xf32, #tpu.memory_space<vmem>>, vector<128x128xf32>
    tpu.vector_store %arg7[%c0_16, %c0_17], %13 {strides = array<i32>} : memref<128x128xf32, #tpu.memory_space<vmem>>, vector<128x128xf32>,
    return
  }
  func.func @transform_0(%arg0: i32) -> (i32, i32) {
    %c0_i32 = arith.constant 0 : i32
    %c0_i32_0 = arith.constant 0 : i32
    %c0_i32_1 = arith.constant 0 : i32
    return %c0_i32, %c0_i32_0 : i32, i32
  }
  func.func @transform_1(%arg0: i32) -> (i32, i32) {
    %c0_i32 = arith.constant 0 : i32
    %c0_i32_0 = arith.constant 0 : i32
    %c0_i32_1 = arith.constant 0 : i32
    return %c0_i32, %c0_i32_0 : i32, i32
  }
  func.func @transform_2(%arg0: i32) -> (i32, i32) {
    %c0_i32 = arith.constant 0 : i32
    %c0_i32_0 = arith.constant 0 : i32
    %c0_i32_1 = arith.constant 0 : i32
    return %c0_i32, %c0_i32_0 : i32, i32
  }
  func.func @transform_3(%arg0: i32) -> (i32, i32) {
    %c0_i32 = arith.constant 0 : i32
    %c0_i32_0 = arith.constant 0 : i32
    %c0_i32_1 = arith.constant 0 : i32
    return %c0_i32, %c0_i32_0 : i32, i32
  }
  func.func @transform_4(%arg0: i32) -> (i32, i32) {
    %c0_i32 = arith.constant 0 : i32
    %c0_i32_0 = arith.constant 0 : i32
    %c0_i32_1 = arith.constant 0 : i32
    return %c0_i32, %c0_i32_0 : i32, i32
  }
  func.func @transform_5(%arg0: i32) -> (i32, i32) {
    %c0_i32 = arith.constant 0 : i32
    %c0_i32_0 = arith.constant 0 : i32
    %c0_i32_1 = arith.constant 0 : i32
    return %c0_i32, %c0_i32_0 : i32, i32
  }
  func.func @transform_6(%arg0: i32) -> (i32, i32) {
    %c0_i32 = arith.constant 0 : i32
    %c0_i32_0 = arith.constant 0 : i32
    %c0_i32_1 = arith.constant 0 : i32
    return %c0_i32, %c0_i32_0 : i32, i32
  }
}

</mosaic_0001>

<bundles_post_ra>
// kernel: tpu_custom_call.1
= control target key start
LH: loop header
LB: loop body
LE: loop exit
PB: predicated region body
PF: predicated region fallthrough
CT: control target
= control target key end

     0   :  { %12 = vsyncpa [#allocation3], 0  ;;  %s1951_s0 = inlined_call_operand.hbm [shape: f32[128,128], index: 0, kind: input, shape index: {}]   ;;  %s1952_s1 = inlined_call_operand.hbm [shape: f32[128,128], index: 1, kind: input, shape index: {}]   ;;  %s1953_s2 = inlined_call_operand.hbm [shape: f32[128,128], index: 2, kind: input, shape index: {}]   ;;  %s1954_s3 = inlined_call_operand.hbm [shape: f32[128,128], index: 3, kind: input, shape index: {}]   ;;  %s1955_s4 = inlined_call_operand.hbm [shape: f32[128,128], index: 4, kind: input, shape index: {}]   ;;  %s1956_s5 = inlined_call_operand.hbm [shape: f32[128,128], index: 5, kind: output, shape index: {0}]   ;;  %s1957_s6 = inlined_call_operand.hbm [shape: f32[128,128], index: 6, kind: output, shape index: {1}]  }
   0x1   :  { %13 = vsyncpa [#allocation6], 0 }
   0x2   :  { %14 = vsyncpa [#allocation9], 0 }
   0x3   :  { %15 = vsyncpa [#allocation4], 0 }
   0x4   :  { %16 = vsyncpa [#allocation13], 0  ;;  %s1611_s21 = smov [#allocation5]   ;;  %s1612_s23 = smov [#allocation8]  }
   0x5   :  { %s34_s22 = sshll.u32 %s1611_s21, 4  ;;  %s58_s24 = sshll.u32 %s1612_s23, 4  ;;  %s35_s22 = int_to_ptr.vmem [resolvable:$true] %s34_s22  ;;  %s59_s24 = int_to_ptr.vmem [resolvable:$true] %s58_s24 }
   0x6   :  { %s1469_s25 = scalar_lea.vmem %s35_s22, 2048  ;;  %p1474_p1 = scmp.lt.s32.totalorder %s35_s22, %s35_s22 }
   0x7   :  { %p1470_p0 = scmp.ne.s32.totalorder %s35_s22, %s1469_s25  ;;  %p1475_p2 = scmp.lt.s32.totalorder %s1469_s25, %s1469_s25 }
   0x9   :  { %p1476_p3 = por %p1475_p2, %p1474_p1 }
   0xb   :  { %p1477_p4 = pnand %p1476_p3, %p1470_p0 }
   0xd   :  { %1480 = shalt.err (!%p1477_p4)
}
   0xe   :  { %s1613_s26 = smov 128   ;;  %s1614_s27 = smov 8  }
   0xf   :  { %40 = dma.hbm_to_vmem [thread:$0]  %s1952_s1, 2048, %s35_s22, [#allocation6], %s1613_s26, %s1613_s26, %s1614_s27  }
  0x10   :  { %s1489_s30 = scalar_lea.vmem %s59_s24, 2048  ;;  %p1494_p6 = scmp.lt.s32.totalorder %s59_s24, %s59_s24 }
  0x11   :  { %p1490_p5 = scmp.ne.s32.totalorder %s59_s24, %s1489_s30  ;;  %p1495_p7 = scmp.lt.s32.totalorder %s1489_s30, %s1489_s30 }
  0x13   :  { %p1496_p8 = por %p1495_p7, %p1494_p6 }
  0x15   :  { %p1497_p9 = pnand %p1496_p8, %p1490_p5 }
  0x17   :  { %1500 = shalt.err (!%p1497_p9)
}
  0x18   :  { %64 = dma.hbm_to_vmem [thread:$0]  %s1954_s3, 2048, %s59_s24, [#allocation9], %s1613_s26, %s1613_s26, %s1614_s27  }
  0x19   :  { %s1615_s9 = smov [#allocation2]   ;;  %s1616_s11 = smov [#allocation7]  }
  0x1a   :  { %s22_s10 = sshll.u32 %s1615_s9, 4  ;;  %s46_s12 = sshll.u32 %s1616_s11, 4  ;;  %s23_s10 = int_to_ptr.vmem [resolvable:$true] %s22_s10  ;;  %s47_s12 = int_to_ptr.vmem [resolvable:$true] %s46_s12 }
  0x1b   :  { %s1509_s1 = scalar_lea.vmem %s23_s10, 2048  ;;  %p1514_p11 = scmp.lt.s32.totalorder %s23_s10, %s23_s10 }
  0x1c   :  { %p1510_p10 = scmp.ne.s32.totalorder %s23_s10, %s1509_s1  ;;  %p1515_p12 = scmp.lt.s32.totalorder %s1509_s1, %s1509_s1 }
  0x1e   :  { %p1516_p13 = por %p1515_p12, %p1514_p11 }
  0x20   :  { %p1517_p0 = pnand %p1516_p13, %p1510_p10 }
  0x22   :  { %1520 = shalt.err (!%p1517_p0)
}
  0x23   :  { %28 = dma.hbm_to_vmem [thread:$0]  %s1951_s0, 2048, %s23_s10, [#allocation3], %s1613_s26, %s1613_s26, %s1614_s27  }
  0x24   :  { %s1529_s3 = scalar_lea.vmem %s47_s12, 2048  ;;  %p1534_p2 = scmp.lt.s32.totalorder %s47_s12, %s47_s12 }
  0x25   :  { %p1530_p1 = scmp.ne.s32.totalorder %s47_s12, %s1529_s3  ;;  %p1535_p3 = scmp.lt.s32.totalorder %s1529_s3, %s1529_s3 }
  0x27   :  { %p1536_p4 = por %p1535_p3, %p1534_p2 }
  0x29   :  { %p1537_p5 = pnand %p1536_p4, %p1530_p1 }
  0x2b   :  { %1540 = shalt.err (!%p1537_p5)
}
  0x2c   :  { %52 = dma.hbm_to_vmem [thread:$0]  %s1953_s2, 2048, %s47_s12, [#allocation6], %s1613_s26, %s1613_s26, %s1614_s27  }
  0x2d   :  { %s1617_s17 = smov [#allocation10]  }
  0x2e   :  { %s70_s18 = sshll.u32 %s1617_s17, 4  ;;  %s71_s18 = int_to_ptr.vmem [resolvable:$true] %s70_s18 }
  0x2f   :  { %s1549_s19 = scalar_lea.vmem %s71_s18, 2048  ;;  %p1554_p7 = scmp.lt.s32.totalorder %s71_s18, %s71_s18 }
  0x30   :  { %p1550_p6 = scmp.ne.s32.totalorder %s71_s18, %s1549_s19  ;;  %p1555_p8 = scmp.lt.s32.totalorder %s1549_s19, %s1549_s19 }
  0x32   :  { %p1556_p9 = por %p1555_p8, %p1554_p7 }
  0x34   :  { %p1557_p10 = pnand %p1556_p9, %p1550_p6 }
  0x36   :  { %1560 = shalt.err (!%p1557_p10)
}
  0x37   :  { %76 = dma.hbm_to_vmem [thread:$0]  %s1955_s4, 2048, %s71_s18, [#allocation9], %s1613_s26, %s1613_s26, %s1614_s27  }
  0x38   :  { %1601 = dma.done.wait [#allocation3], 2048  }
  0x39   :  { %1602 = vsyncadd [#allocation3], 4294965248 }
  0x3a   :  { %1603 = dma.done.wait [#allocation6], 4096  }
  0x3b   :  { %1604 = vsyncadd [#allocation6], 4294963200 }
  0x3c   :  { %1605 = dma.done.wait [#allocation9], 4096  }
  0x3d   :  { %1606 = vsyncadd [#allocation9], 4294963200  ;;  %v139_v0 = vld [vmem:[#allocation7 + $0x78] sm:$0xff]  ;;  %v138_v1 = vld [vmem:[#allocation7 + $0x70] sm:$0xff]  ;;  %s1618_s2 = smov [#allocation11]  }
  0x3e   :  { %1140 = vmatprep.subr.mxu0 %v139_v0  ;;  %v137_v2 = vld [vmem:[#allocation7 + $0x68] sm:$0xff]  ;;  %v136_v3 = vld [vmem:[#allocation7 + $0x60] sm:$0xff]  ;;  %v135_v5 = vld [vmem:[#allocation7 + $0x58] sm:$0xff]  ;;  %s950_s4 = sshll.u32 %s1618_s2, 4  ;;  %s951_s4 = int_to_ptr.vmem [resolvable:$true] %s950_s4 }
  0x3f   :  { %1141 = vmatpush3.msra.mxu0 %v139_v0  ;;  %v108_v4 = vld [vmem:[#allocation2] sm:$0xff]  ;;  %v134_v6 = vld [vmem:[#allocation7 + $0x50] sm:$0xff]  ;;  %v133_v7 = vld [vmem:[#allocation7 + $0x48] sm:$0xff]  ;;  %s1561_s21 = scalar_lea.vmem %s951_s4, 2048  ;;  %p1566_p12 = scmp.lt.s32.totalorder %s951_s4, %s951_s4 }
  0x40   :  { %1142 = vmatprep.subr.mxu0 %v138_v1  ;;  %1172 = vmatprep.mubr.f32.mxu0 %v108_v4  ;;  %v132_v8 = vld [vmem:[#allocation7 + $0x40] sm:$0xff]  ;;  %v131_v9 = vld [vmem:[#allocation7 + $0x38] sm:$0xff]  ;;  %v130_v10 = vld [vmem:[#allocation7 + $0x30] sm:$0xff]  ;;  %p1562_p11 = scmp.ne.s32.totalorder %s951_s4, %s1561_s21  ;;  %p1567_p13 = scmp.lt.s32.totalorder %s1561_s21, %s1561_s21 }
  0x41   :  { %1143 = vmatpush3.msra.mxu0 %v138_v1  ;;  %v129_v11 = vld [vmem:[#allocation7 + $0x28] sm:$0xff]  ;;  %v128_v12 = vld [vmem:[#allocation7 + $0x20] sm:$0xff]  ;;  %v127_v13 = vld [vmem:[#allocation7 + $0x18] sm:$0xff] }
  0x42   :  { %1144 = vmatprep.subr.mxu0 %v137_v2  ;;  %v126_v14 = vld [vmem:[#allocation7 + $0x10] sm:$0xff]  ;;  %v125_v15 = vld [vmem:[#allocation7 + $0x8] sm:$0xff]  ;;  %v124_v16 = vld [vmem:[#allocation7] sm:$0xff]  ;;  %p1568_p0 = por %p1567_p13, %p1566_p12 }
  0x43   :  { %1145 = vmatpush3.msra.mxu0 %v137_v2  ;;  %v109_v17 = vld [vmem:[#allocation2 + $0x8] sm:$0xff]  ;;  %v110_v18 = vld [vmem:[#allocation2 + $0x10] sm:$0xff]  ;;  %v111_v19 = vld [vmem:[#allocation2 + $0x18] sm:$0xff] }
  0x44   :  { %1146 = vmatprep.subr.mxu0 %v136_v3  ;;  %v112_v20 = vld [vmem:[#allocation2 + $0x20] sm:$0xff]  ;;  %v113_v21 = vld [vmem:[#allocation2 + $0x28] sm:$0xff]  ;;  %v114_v22 = vld [vmem:[#allocation2 + $0x30] sm:$0xff]  ;;  %p1569_p1 = pnand %p1568_p0, %p1562_p11 }
  0x45   :  { %1147 = vmatpush3.msra.mxu0 %v136_v3  ;;  %v115_v23 = vld [vmem:[#allocation2 + $0x38] sm:$0xff]  ;;  %v116_v24 = vld [vmem:[#allocation2 + $0x40] sm:$0xff]  ;;  %v117_v25 = vld [vmem:[#allocation2 + $0x48] sm:$0xff] }
  0x46   :  { %1148 = vmatprep.subr.mxu0 %v135_v5  ;;  %v118_v26 = vld [vmem:[#allocation2 + $0x50] sm:$0xff]  ;;  %v119_v27 = vld [vmem:[#allocation2 + $0x58] sm:$0xff]  ;;  %v120_v28 = vld [vmem:[#allocation2 + $0x60] sm:$0xff] }
  0x47   :  { %1149 = vmatpush3.msra.mxu0 %v135_v5  ;;  %v121_v29 = vld [vmem:[#allocation2 + $0x68] sm:$0xff]  ;;  %v122_v30 = vld [vmem:[#allocation2 + $0x70] sm:$0xff]  ;;  %v123_v31 = vld [vmem:[#allocation2 + $0x78] sm:$0xff] }
  0x48   :  { %1150 = vmatprep.subr.mxu0 %v134_v6  ;;  %v1685_v32 = vld [vmem:[#allocation5] sm:$0xff]  ;;  %v461_v33 = vld [vmem:[#allocation8 + $0x78] sm:$0xff]  ;;  %v460_v34 = vld [vmem:[#allocation8 + $0x70] sm:$0xff] }
  0x49   :  { %1151 = vmatpush3.msra.mxu0 %v134_v6  ;;  %1228 = vmatprep.mubr.f32.mxu1 %v1685_v32  ;;  %v459_v35 = vld [vmem:[#allocation8 + $0x68] sm:$0xff]  ;;  %v458_v36 = vld [vmem:[#allocation8 + $0x60] sm:$0xff]  ;;  %v457_v37 = vld [vmem:[#allocation8 + $0x58] sm:$0xff] }
  0x4a   :  { %1152 = vmatprep.subr.mxu0 %v133_v7  ;;  %v456_v38 = vld [vmem:[#allocation8 + $0x50] sm:$0xff]  ;;  %v455_v39 = vld [vmem:[#allocation8 + $0x48] sm:$0xff]  ;;  %v454_v40 = vld [vmem:[#allocation8 + $0x40] sm:$0xff] }
  0x4b   :  { %1153 = vmatpush3.msra.mxu0 %v133_v7  ;;  %v453_v41 = vld [vmem:[#allocation8 + $0x38] sm:$0xff]  ;;  %v452_v42 = vld [vmem:[#allocation8 + $0x30] sm:$0xff]  ;;  %v451_v43 = vld [vmem:[#allocation8 + $0x28] sm:$0xff] }
  0x4c   :  { %1154 = vmatprep.subr.mxu0 %v132_v8  ;;  %v450_v44 = vld [vmem:[#allocation8 + $0x20] sm:$0xff]  ;;  %v449_v45 = vld [vmem:[#allocation8 + $0x18] sm:$0xff]  ;;  %v1688_v62 = vld [vmem:[#allocation5 + $0x8] sm:$0xff] }
  0x4d   :  { %1155 = vmatpush3.msra.mxu0 %v132_v8  ;;  %v1690_v63 = vld [vmem:[#allocation5 + $0x10] sm:$0xff]  ;;  %v1694_v0 = vld [vmem:[#allocation5 + $0x18] sm:$0xff]  ;;  %v1696_v1 = vld [vmem:[#allocation5 + $0x20] sm:$0xff] }
  0x4e   :  { %1156 = vmatprep.subr.mxu0 %v131_v9  ;;  %v1700_v2 = vld [vmem:[#allocation5 + $0x28] sm:$0xff]  ;;  %v1702_v3 = vld [vmem:[#allocation5 + $0x30] sm:$0xff]  ;;  %v1706_v4 = vld [vmem:[#allocation5 + $0x38] sm:$0xff] }
  0x4f   :  { %1157 = vmatpush3.msra.mxu0 %v131_v9  ;;  %v1708_v5 = vld [vmem:[#allocation5 + $0x40] sm:$0xff]  ;;  %v1712_v6 = vld [vmem:[#allocation5 + $0x48] sm:$0xff]  ;;  %v1714_v7 = vld [vmem:[#allocation5 + $0x50] sm:$0xff] }
  0x50   :  { %1158 = vmatprep.subr.mxu0 %v130_v10  ;;  %v1718_v8 = vld [vmem:[#allocation5 + $0x58] sm:$0xff]  ;;  %v1720_v9 = vld [vmem:[#allocation5 + $0x60] sm:$0xff] }
  0x51   :  { %1159 = vmatpush3.msra.mxu0 %v130_v10  ;;  %v1724_v10 = vld [vmem:[#allocation5 + $0x68] sm:$0xff] }
  0x52   :  { %1160 = vmatprep.subr.mxu0 %v129_v11 }
  0x53   :  { %1161 = vmatpush3.msra.mxu0 %v129_v11  ;;  %v1726_v11 = vld [vmem:[#allocation5 + $0x70] sm:$0xff] }
  0x54   :  { %1162 = vmatprep.subr.mxu0 %v128_v12 }
  0x55   :  { %1163 = vmatpush3.msra.mxu0 %v128_v12  ;;  %v1730_v12 = vld [vmem:[#allocation5 + $0x78] sm:$0xff] }
  0x56   :  { %1164 = vmatprep.subr.mxu0 %v127_v13 }
  0x57   :  { %1165 = vmatpush3.msra.mxu0 %v127_v13  ;;  %v448_v13 = vld [vmem:[#allocation8 + $0x10] sm:$0xff] }
  0x58   :  { %1166 = vmatprep.subr.mxu0 %v126_v14 }
  0x59   :  { %1167 = vmatpush3.msra.mxu0 %v126_v14  ;;  %v447_v14 = vld [vmem:[#allocation8 + $0x8] sm:$0xff] }
  0x5a   :  { %1168 = vmatprep.subr.mxu0 %v125_v15 }
  0x5b   :  { %1169 = vmatpush3.msra.mxu0 %v125_v15  ;;  %v446_v15 = vld [vmem:[#allocation8] sm:$0xff] }
  0x5c   :  { %1170 = vmatprep.subr.mxu0 %v124_v16 }
  0x5d   :  { %1171 = vmatpush3.msra.mxu0 %v124_v16 }
  0x5e   :  { %1173 = vmatmul.mubr.f32.vlgmr.msra.gmra.mxu0 %v109_v17  ;;  %1252 = vmatprep.subr.mxu0 %v461_v33 }
  0x5f   :  { %1175 = vmatprep.mubr.f32.mxu0 %v110_v18  ;;  %1253 = vmatpush3.msra.mxu0 %v461_v33 }
  0x60   :  { %1254 = vmatprep.subr.mxu0 %v460_v34 }
  0x61   :  { %1255 = vmatpush3.msra.mxu0 %v460_v34 }
  0x62   :  { %1176 = vmatmul.mubr.f32.gmra.mxu0 %v111_v19  ;;  %1256 = vmatprep.subr.mxu0 %v459_v35 }
  0x63   :  { %1178 = vmatprep.mubr.f32.mxu0 %v112_v20  ;;  %1257 = vmatpush3.msra.mxu0 %v459_v35 }
  0x64   :  { %1258 = vmatprep.subr.mxu0 %v458_v36 }
  0x65   :  { %1259 = vmatpush3.msra.mxu0 %v458_v36 }
  0x66   :  { %1179 = vmatmul.mubr.f32.gmra.mxu0 %v113_v21  ;;  %1260 = vmatprep.subr.mxu0 %v457_v37 }
  0x67   :  { %1181 = vmatprep.mubr.f32.mxu0 %v114_v22  ;;  %1261 = vmatpush3.msra.mxu0 %v457_v37 }
  0x68   :  { %1262 = vmatprep.subr.mxu0 %v456_v38 }
  0x69   :  { %1263 = vmatpush3.msra.mxu0 %v456_v38 }
  0x6a   :  { %1182 = vmatmul.mubr.f32.gmra.mxu0 %v115_v23  ;;  %1264 = vmatprep.subr.mxu0 %v455_v39 }
  0x6b   :  { %1184 = vmatprep.mubr.f32.mxu0 %v116_v24  ;;  %1265 = vmatpush3.msra.mxu0 %v455_v39 }
  0x6c   :  { %1266 = vmatprep.subr.mxu0 %v454_v40 }
  0x6d   :  { %1267 = vmatpush3.msra.mxu0 %v454_v40 }
  0x6e   :  { %1185 = vmatmul.mubr.f32.gmra.mxu0 %v117_v25  ;;  %1268 = vmatprep.subr.mxu0 %v453_v41 }
  0x6f   :  { %1187 = vmatprep.mubr.f32.mxu0 %v118_v26  ;;  %1269 = vmatpush3.msra.mxu0 %v453_v41 }
  0x70   :  { %1270 = vmatprep.subr.mxu0 %v452_v42 }
  0x71   :  { %1271 = vmatpush3.msra.mxu0 %v452_v42 }
  0x72   :  { %1188 = vmatmul.mubr.f32.gmra.mxu0 %v119_v27  ;;  %1272 = vmatprep.subr.mxu0 %v451_v43 }
  0x73   :  { %1190 = vmatprep.mubr.f32.mxu0 %v120_v28  ;;  %1273 = vmatpush3.msra.mxu0 %v451_v43 }
  0x74   :  { %1274 = vmatprep.subr.mxu0 %v450_v44 }
  0x75   :  { %1275 = vmatpush3.msra.mxu0 %v450_v44 }
  0x76   :  { %1191 = vmatmul.mubr.f32.gmra.mxu0 %v121_v29  ;;  %1276 = vmatprep.subr.mxu0 %v449_v45 }
  0x77   :  { %1193 = vmatprep.mubr.f32.mxu0 %v122_v30  ;;  %1277 = vmatpush3.msra.mxu0 %v449_v45 }
  0x78   :  { %1278 = vmatprep.subr.mxu0 %v448_v13 }
  0x79   :  { %1279 = vmatpush3.msra.mxu0 %v448_v13 }
  0x7a   :  { %1194 = vmatmul.mubr.f32.gmra.mxu0 %v123_v31  ;;  %1280 = vmatprep.subr.mxu0 %v447_v14 }
  0x7b   :  { %1281 = vmatpush3.msra.mxu0 %v447_v14 }
  0x7c   :  { %1282 = vmatprep.subr.mxu0 %v446_v15 }
  0x7d   :  { %1283 = vmatpush3.msra.mxu0 %v446_v15 }
 0x11e   :  { %v1174_v46 = vpop.f32.mrf.mxu0 }
 0x120   :  { %v206_v47 = vpop.f32.mrf.mxu0 }
 0x122   :  { %v1177_v48 = vpop.f32.mrf.mxu0 }
 0x124   :  { %v216_v49 = vpop.f32.mrf.mxu0 }
 0x126   :  { %v1180_v50 = vpop.f32.mrf.mxu0 }
 0x128   :  { %v226_v51 = vpop.f32.mrf.mxu0 }
 0x12a   :  { %v1183_v52 = vpop.f32.mrf.mxu0 }
 0x12c   :  { %v236_v53 = vpop.f32.mrf.mxu0 }
 0x12e   :  { %v1186_v54 = vpop.f32.mrf.mxu0 }
 0x130   :  { %v246_v55 = vpop.f32.mrf.mxu0 }
 0x132   :  { %v1189_v56 = vpop.f32.mrf.mxu0 }
 0x134   :  { %v256_v57 = vpop.f32.mrf.mxu0 }
 0x136   :  { %v1192_v58 = vpop.f32.mrf.mxu0 }
 0x138   :  { %v266_v59 = vpop.f32.mrf.mxu0 }
 0x13a   :  { %v1195_v60 = vpop.f32.mrf.mxu0 }
 0x13b   :  { %1196 = vmatprep.subr.mxu1 %v1195_v60 }
 0x13c   :  { %v276_v61 = vpop.f32.mrf.mxu0  ;;  %1197 = vmatpush3.msra.mxu1 %v1195_v60  ;;  %v1860_v60 = vld [vmem:[#allocation10 + $0x18] sm:$0xff] }
 0x13d   :  { %1198 = vmatprep.subr.mxu1 %v276_v61 }
 0x13e   :  { %1199 = vmatpush3.msra.mxu1 %v276_v61 }
 0x13f   :  { %1200 = vmatprep.subr.mxu1 %v1192_v58 }
 0x140   :  { %1201 = vmatpush3.msra.mxu1 %v1192_v58  ;;  %v1852_v58 = vld [vmem:[#allocation10 + $0x28] sm:$0xff] }
 0x141   :  { %1202 = vmatprep.subr.mxu1 %v266_v59 }
 0x142   :  { %1203 = vmatpush3.msra.mxu1 %v266_v59  ;;  %v1856_v59 = vld [vmem:[#allocation10 + $0x20] sm:$0xff] }
 0x143   :  { %1204 = vmatprep.subr.mxu1 %v1189_v56 }
 0x144   :  { %1205 = vmatpush3.msra.mxu1 %v1189_v56  ;;  %v1844_v56 = vld [vmem:[#allocation10 + $0x38] sm:$0xff] }
 0x145   :  { %1206 = vmatprep.subr.mxu1 %v256_v57 }
 0x146   :  { %1207 = vmatpush3.msra.mxu1 %v256_v57  ;;  %v1848_v57 = vld [vmem:[#allocation10 + $0x30] sm:$0xff] }
 0x147   :  { %1208 = vmatprep.subr.mxu1 %v1186_v54 }
 0x148   :  { %1209 = vmatpush3.msra.mxu1 %v1186_v54  ;;  %v1836_v54 = vld [vmem:[#allocation10 + $0x48] sm:$0xff] }
 0x149   :  { %1210 = vmatprep.subr.mxu1 %v246_v55 }
 0x14a   :  { %1211 = vmatpush3.msra.mxu1 %v246_v55  ;;  %v1840_v55 = vld [vmem:[#allocation10 + $0x40] sm:$0xff] }
 0x14b   :  { %1212 = vmatprep.subr.mxu1 %v1183_v52 }
 0x14c   :  { %1213 = vmatpush3.msra.mxu1 %v1183_v52  ;;  %v1828_v52 = vld [vmem:[#allocation10 + $0x58] sm:$0xff] }
 0x14d   :  { %1214 = vmatprep.subr.mxu1 %v236_v53 }
 0x14e   :  { %1215 = vmatpush3.msra.mxu1 %v236_v53  ;;  %v1832_v53 = vld [vmem:[#allocation10 + $0x50] sm:$0xff] }
 0x14f   :  { %1216 = vmatprep.subr.mxu1 %v1180_v50 }
 0x150   :  { %1217 = vmatpush3.msra.mxu1 %v1180_v50  ;;  %v1820_v50 = vld [vmem:[#allocation10 + $0x68] sm:$0xff] }
 0x151   :  { %1218 = vmatprep.subr.mxu1 %v226_v51 }
 0x152   :  { %1219 = vmatpush3.msra.mxu1 %v226_v51  ;;  %v1824_v51 = vld [vmem:[#allocation10 + $0x60] sm:$0xff] }
 0x153   :  { %1220 = vmatprep.subr.mxu1 %v1177_v48 }
 0x154   :  { %1221 = vmatpush3.msra.mxu1 %v1177_v48  ;;  %v1814_v48 = vld [vmem:[#allocation10 + $0x78] sm:$0xff] }
 0x155   :  { %1222 = vmatprep.subr.mxu1 %v216_v49  ;;  %1364 = vmatprep.subr.mxu0 %v1814_v48 }
 0x156   :  { %1223 = vmatpush3.msra.mxu1 %v216_v49  ;;  %v1816_v49 = vld [vmem:[#allocation10 + $0x70] sm:$0xff] }
 0x157   :  { %1224 = vmatprep.subr.mxu1 %v1174_v46 }
 0x158   :  { %1225 = vmatpush3.msra.mxu1 %v1174_v46 }
 0x159   :  { %1226 = vmatprep.subr.mxu1 %v206_v47 }
 0x15a   :  { %1227 = vmatpush3.msra.mxu1 %v206_v47 }
 0x15b   :  { %1229 = vmatmul.mubr.f32.vlgmr.msra.gmra.mxu1 %v1688_v62 }
 0x15c   :  { %1231 = vmatprep.mubr.f32.mxu1 %v1690_v63 }
 0x15f   :  { %1232 = vmatmul.mubr.f32.gmra.mxu1 %v1694_v0 }
 0x160   :  { %1234 = vmatprep.mubr.f32.mxu1 %v1696_v1 }
 0x163   :  { %1235 = vmatmul.mubr.f32.gmra.mxu1 %v1700_v2 }
 0x164   :  { %1237 = vmatprep.mubr.f32.mxu1 %v1702_v3 }
 0x167   :  { %1238 = vmatmul.mubr.f32.gmra.mxu1 %v1706_v4 }
 0x168   :  { %1240 = vmatprep.mubr.f32.mxu1 %v1708_v5 }
 0x16b   :  { %1241 = vmatmul.mubr.f32.gmra.mxu1 %v1712_v6 }
 0x16c   :  { %1243 = vmatprep.mubr.f32.mxu1 %v1714_v7 }
 0x16f   :  { %1244 = vmatmul.mubr.f32.gmra.mxu1 %v1718_v8 }
 0x170   :  { %1246 = vmatprep.mubr.f32.mxu1 %v1720_v9 }
 0x173   :  { %1247 = vmatmul.mubr.f32.gmra.mxu1 %v1724_v10 }
 0x174   :  { %1249 = vmatprep.mubr.f32.mxu1 %v1726_v11 }
 0x177   :  { %1250 = vmatmul.mubr.f32.gmra.mxu1 %v1730_v12 }
 0x178   :  { %1340 = vmatprep.mubr.f32.mxu1 %v1685_v32 }
 0x21b   :  { %v1734_v16 = vpop.f32.mrf.mxu1 }
 0x21c   :  { %v431_v19 = vmax.f32 %v1734_v16, 0.0 }
 0x21d   :  { %v1736_v17 = vpop.f32.mrf.mxu1 }
 0x21e   :  { %v430_v18 = vmax.f32 %v1736_v17, 0.0 }
 0x21f   :  { %v1740_v20 = vpop.f32.mrf.mxu1 }
 0x220   :  { %1284 = vmatprep.mubr.f32.mxu0 %v430_v18  ;;  %v433_v23 = vmax.f32 %v1740_v20, 0.0 }
 0x221   :  { %v1744_v21 = vpop.f32.mrf.mxu1  ;;  %1285 = vmatmul.mubr.f32.vlgmr.msra.gmra.mxu0 %v431_v19 }
 0x222   :  { %v432_v22 = vmax.f32 %v1744_v21, 0.0  ;;  %1365 = vmatpush3.msra.mxu0 %v1814_v48 }
 0x223   :  { %v1750_v24 = vpop.f32.mrf.mxu1  ;;  %1366 = vmatprep.subr.mxu0 %v1816_v49 }
 0x224   :  { %1287 = vmatprep.mubr.f32.mxu0 %v432_v22  ;;  %v1969_v27 = vmax.f32 %v1750_v24, 0.0  ;;  %1367 = vmatpush3.msra.mxu0 %v1816_v49 }
 0x225   :  { %v1754_v25 = vpop.f32.mrf.mxu1  ;;  %1288 = vmatmul.mubr.f32.gmra.mxu0 %v433_v23  ;;  %1368 = vmatprep.subr.mxu0 %v1820_v50 }
 0x226   :  { %v1968_v26 = vmax.f32 %v1754_v25, 0.0  ;;  %1369 = vmatpush3.msra.mxu0 %v1820_v50  ;;  %v1971_v16 = vmax.f32 %v1754_v25, 0.0 }
 0x227   :  { %v1760_v28 = vpop.f32.mrf.mxu1  ;;  %1370 = vmatprep.subr.mxu0 %v1824_v51 }
 0x228   :  { %1290 = vmatprep.mubr.f32.mxu0 %v1968_v26  ;;  %v1967_v31 = vmax.f32 %v1760_v28, 0.0  ;;  %1371 = vmatpush3.msra.mxu0 %v1824_v51 }
 0x229   :  { %v1764_v29 = vpop.f32.mrf.mxu1  ;;  %1291 = vmatmul.mubr.f32.gmra.mxu0 %v1969_v27  ;;  %1372 = vmatprep.subr.mxu0 %v1828_v52 }
 0x22a   :  { %v1966_v30 = vmax.f32 %v1764_v29, 0.0  ;;  %1373 = vmatpush3.msra.mxu0 %v1828_v52 }
 0x22b   :  { %v1770_v32 = vpop.f32.mrf.mxu1  ;;  %1374 = vmatprep.subr.mxu0 %v1832_v53 }
 0x22c   :  { %1293 = vmatprep.mubr.f32.mxu0 %v1966_v30  ;;  %v1965_v35 = vmax.f32 %v1770_v32, 0.0  ;;  %1375 = vmatpush3.msra.mxu0 %v1832_v53 }
 0x22d   :  { %v1774_v33 = vpop.f32.mrf.mxu1  ;;  %1294 = vmatmul.mubr.f32.gmra.mxu0 %v1967_v31  ;;  %1376 = vmatprep.subr.mxu0 %v1836_v54 }
 0x22e   :  { %v1964_v34 = vmax.f32 %v1774_v33, 0.0  ;;  %1377 = vmatpush3.msra.mxu0 %v1836_v54 }
 0x22f   :  { %v1780_v36 = vpop.f32.mrf.mxu1  ;;  %1378 = vmatprep.subr.mxu0 %v1840_v55 }
 0x230   :  { %1296 = vmatprep.mubr.f32.mxu0 %v1964_v34  ;;  %v1963_v39 = vmax.f32 %v1780_v36, 0.0  ;;  %1379 = vmatpush3.msra.mxu0 %v1840_v55 }
 0x231   :  { %v1784_v37 = vpop.f32.mrf.mxu1  ;;  %1297 = vmatmul.mubr.f32.gmra.mxu0 %v1965_v35  ;;  %1380 = vmatprep.subr.mxu0 %v1844_v56 }
 0x232   :  { %v1962_v38 = vmax.f32 %v1784_v37, 0.0  ;;  %1381 = vmatpush3.msra.mxu0 %v1844_v56 }
 0x233   :  { %v1790_v40 = vpop.f32.mrf.mxu1  ;;  %1382 = vmatprep.subr.mxu0 %v1848_v57 }
 0x234   :  { %1299 = vmatprep.mubr.f32.mxu0 %v1962_v38  ;;  %v1961_v43 = vmax.f32 %v1790_v40, 0.0  ;;  %1383 = vmatpush3.msra.mxu0 %v1848_v57 }
 0x235   :  { %v1794_v41 = vpop.f32.mrf.mxu1  ;;  %1300 = vmatmul.mubr.f32.gmra.mxu0 %v1963_v39  ;;  %1384 = vmatprep.subr.mxu0 %v1852_v58 }
 0x236   :  { %v1960_v42 = vmax.f32 %v1794_v41, 0.0  ;;  %1385 = vmatpush3.msra.mxu0 %v1852_v58 }
 0x237   :  { %v1800_v44 = vpop.f32.mrf.mxu1  ;;  %1386 = vmatprep.subr.mxu0 %v1856_v59 }
 0x238   :  { %1302 = vmatprep.mubr.f32.mxu0 %v1960_v42  ;;  %v1959_v47 = vmax.f32 %v1800_v44, 0.0  ;;  %1387 = vmatpush3.msra.mxu0 %v1856_v59 }
 0x239   :  { %v1804_v45 = vpop.f32.mrf.mxu1  ;;  %1303 = vmatmul.mubr.f32.gmra.mxu0 %v1961_v43  ;;  %1388 = vmatprep.subr.mxu0 %v1860_v60 }
 0x23a   :  { %v1958_v46 = vmax.f32 %v1804_v45, 0.0  ;;  %1389 = vmatpush3.msra.mxu0 %v1860_v60 }
 0x23c   :  { %1305 = vmatprep.mubr.f32.mxu0 %v1958_v46 }
 0x23d   :  { %1306 = vmatmul.mubr.f32.gmra.mxu0 %v1959_v47 }
 0x2e1   :  { %v1286_v61 = vpop.f32.mrf.mxu0 }
 0x2e3   :  { %v528_v13 = vpop.f32.mrf.mxu0 }
 0x2e5   :  { %v1289_v14 = vpop.f32.mrf.mxu0 }
 0x2e7   :  { %v538_v15 = vpop.f32.mrf.mxu0 }
 0x2e9   :  { %v1292_v46 = vpop.f32.mrf.mxu0 }
 0x2eb   :  { %v548_v47 = vpop.f32.mrf.mxu0 }
 0x2ed   :  { %v1295_v42 = vpop.f32.mrf.mxu0 }
 0x2ef   :  { %v558_v43 = vpop.f32.mrf.mxu0 }
 0x2f1   :  { %v1298_v38 = vpop.f32.mrf.mxu0 }
 0x2f3   :  { %v568_v39 = vpop.f32.mrf.mxu0 }
 0x2f5   :  { %v1301_v34 = vpop.f32.mrf.mxu0 }
 0x2f7   :  { %v578_v35 = vpop.f32.mrf.mxu0 }
 0x2f9   :  { %v1304_v30 = vpop.f32.mrf.mxu0 }
 0x2fb   :  { %v588_v31 = vpop.f32.mrf.mxu0 }
 0x2fd   :  { %v1307_v26 = vpop.f32.mrf.mxu0 }
 0x2fe   :  { %1308 = vmatprep.subr.mxu1 %v1307_v26 }
 0x2ff   :  { %v598_v27 = vpop.f32.mrf.mxu0  ;;  %1309 = vmatpush3.msra.mxu1 %v1307_v26  ;;  %v1974_v26 = vmax.f32 %v1770_v32, 0.0 }
 0x300   :  { %1310 = vmatprep.subr.mxu1 %v598_v27 }
 0x301   :  { %1311 = vmatpush3.msra.mxu1 %v598_v27 }
 0x302   :  { %1312 = vmatprep.subr.mxu1 %v1304_v30 }
 0x303   :  { %1313 = vmatpush3.msra.mxu1 %v1304_v30  ;;  %v1975_v30 = vmax.f32 %v1774_v33, 0.0 }
 0x304   :  { %1314 = vmatprep.subr.mxu1 %v588_v31 }
 0x305   :  { %1315 = vmatpush3.msra.mxu1 %v588_v31 }
 0x306   :  { %1316 = vmatprep.subr.mxu1 %v1301_v34 }
 0x307   :  { %1317 = vmatpush3.msra.mxu1 %v1301_v34  ;;  %v1976_v34 = vmax.f32 %v1780_v36, 0.0 }
 0x308   :  { %1318 = vmatprep.subr.mxu1 %v578_v35 }
 0x309   :  { %1319 = vmatpush3.msra.mxu1 %v578_v35 }
 0x30a   :  { %1320 = vmatprep.subr.mxu1 %v1298_v38 }
 0x30b   :  { %1321 = vmatpush3.msra.mxu1 %v1298_v38  ;;  %v1977_v38 = vmax.f32 %v1784_v37, 0.0 }
 0x30c   :  { %1322 = vmatprep.subr.mxu1 %v568_v39 }
 0x30d   :  { %1323 = vmatpush3.msra.mxu1 %v568_v39 }
 0x30e   :  { %1324 = vmatprep.subr.mxu1 %v1295_v42 }
 0x30f   :  { %1325 = vmatpush3.msra.mxu1 %v1295_v42  ;;  %v1978_v42 = vmax.f32 %v1790_v40, 0.0 }
 0x310   :  { %1326 = vmatprep.subr.mxu1 %v558_v43 }
 0x311   :  { %1327 = vmatpush3.msra.mxu1 %v558_v43 }
 0x312   :  { %1328 = vmatprep.subr.mxu1 %v1292_v46 }
 0x313   :  { %1329 = vmatpush3.msra.mxu1 %v1292_v46  ;;  %v1979_v46 = vmax.f32 %v1794_v41, 0.0 }
 0x314   :  { %1330 = vmatprep.subr.mxu1 %v548_v47 }
 0x315   :  { %1331 = vmatpush3.msra.mxu1 %v548_v47 }
 0x316   :  { %1332 = vmatprep.subr.mxu1 %v1289_v14 }
 0x317   :  { %1333 = vmatpush3.msra.mxu1 %v1289_v14 }
 0x318   :  { %1334 = vmatprep.subr.mxu1 %v538_v15 }
 0x319   :  { %1335 = vmatpush3.msra.mxu1 %v538_v15 }
 0x31a   :  { %1336 = vmatprep.subr.mxu1 %v1286_v61 }
 0x31b   :  { %1337 = vmatpush3.msra.mxu1 %v1286_v61 }
 0x31c   :  { %1338 = vmatprep.subr.mxu1 %v528_v13 }
 0x31d   :  { %1339 = vmatpush3.msra.mxu1 %v528_v13 }
 0x31e   :  { %1341 = vmatmul.mubr.f32.vlgmr.msra.gmra.mxu1 %v1688_v62  ;;  %1420 = vmatprep.subr.mxu1 %v1814_v48  ;;  %v770_v62 = vld [vmem:[#allocation10 + $0x10] sm:$0xff] }
 0x31f   :  { %1343 = vmatprep.mubr.f32.mxu1 %v1690_v63  ;;  %1436 = vmatpush3.msra.mxu1 %v1814_v48  ;;  %v769_v63 = vld [vmem:[#allocation10 + $0x8] sm:$0xff]  ;;  %v1980_v48 = vmax.f32 %v1800_v44, 0.0 }
 0x320   :  { %1421 = vmatprep.subr.mxu1 %v1816_v49  ;;  %1390 = vmatprep.subr.mxu0 %v770_v62 }
 0x321   :  { %1437 = vmatpush3.msra.mxu1 %v1816_v49  ;;  %1391 = vmatpush3.msra.mxu0 %v770_v62 }
 0x322   :  { %1344 = vmatmul.mubr.f32.gmra.mxu1 %v1694_v0  ;;  %1422 = vmatprep.subr.mxu1 %v1820_v50  ;;  %v768_v0 = vld [vmem:[#allocation10] sm:$0xff] }
 0x323   :  { %1346 = vmatprep.mubr.f32.mxu1 %v1696_v1  ;;  %1438 = vmatpush3.msra.mxu1 %v1820_v50  ;;  %v1981_v50 = vmax.f32 %v1804_v45, 0.0 }
 0x324   :  { %1423 = vmatprep.subr.mxu1 %v1824_v51  ;;  %1392 = vmatprep.subr.mxu0 %v769_v63 }
 0x325   :  { %1439 = vmatpush3.msra.mxu1 %v1824_v51  ;;  %1393 = vmatpush3.msra.mxu0 %v769_v63 }
 0x326   :  { %1347 = vmatmul.mubr.f32.gmra.mxu1 %v1700_v2  ;;  %1424 = vmatprep.subr.mxu1 %v1828_v52 }
 0x327   :  { %1349 = vmatprep.mubr.f32.mxu1 %v1702_v3  ;;  %1440 = vmatpush3.msra.mxu1 %v1828_v52 }
 0x328   :  { %1425 = vmatprep.subr.mxu1 %v1832_v53  ;;  %1394 = vmatprep.subr.mxu0 %v768_v0 }
 0x329   :  { %1441 = vmatpush3.msra.mxu1 %v1832_v53  ;;  %1395 = vmatpush3.msra.mxu0 %v768_v0 }
 0x32a   :  { %1350 = vmatmul.mubr.f32.gmra.mxu1 %v1706_v4  ;;  %1426 = vmatprep.subr.mxu1 %v1836_v54 }
 0x32b   :  { %1352 = vmatprep.mubr.f32.mxu1 %v1708_v5  ;;  %1442 = vmatpush3.msra.mxu1 %v1836_v54 }
 0x32c   :  { %1427 = vmatprep.subr.mxu1 %v1840_v55 }
 0x32d   :  { %1443 = vmatpush3.msra.mxu1 %v1840_v55 }
 0x32e   :  { %1353 = vmatmul.mubr.f32.gmra.mxu1 %v1712_v6  ;;  %1428 = vmatprep.subr.mxu1 %v1844_v56 }
 0x32f   :  { %1355 = vmatprep.mubr.f32.mxu1 %v1714_v7  ;;  %1444 = vmatpush3.msra.mxu1 %v1844_v56 }
 0x330   :  { %1429 = vmatprep.subr.mxu1 %v1848_v57 }
 0x331   :  { %1445 = vmatpush3.msra.mxu1 %v1848_v57 }
 0x332   :  { %1356 = vmatmul.mubr.f32.gmra.mxu1 %v1718_v8  ;;  %1430 = vmatprep.subr.mxu1 %v1852_v58 }
 0x333   :  { %1358 = vmatprep.mubr.f32.mxu1 %v1720_v9  ;;  %1446 = vmatpush3.msra.mxu1 %v1852_v58 }
 0x334   :  { %1431 = vmatprep.subr.mxu1 %v1856_v59 }
 0x335   :  { %1447 = vmatpush3.msra.mxu1 %v1856_v59 }
 0x336   :  { %1359 = vmatmul.mubr.f32.gmra.mxu1 %v1724_v10  ;;  %1432 = vmatprep.subr.mxu1 %v1860_v60  ;;  %v1970_v10 = vmax.f32 %v1750_v24, 0.0 }
 0x337   :  { %1361 = vmatprep.mubr.f32.mxu1 %v1726_v11  ;;  %1448 = vmatpush3.msra.mxu1 %v1860_v60 }
 0x338   :  { %1433 = vmatprep.subr.mxu1 %v770_v62 }
 0x339   :  { %1449 = vmatpush3.msra.mxu1 %v770_v62 }
 0x33a   :  { %1362 = vmatmul.mubr.f32.gmra.mxu1 %v1730_v12  ;;  %1434 = vmatprep.subr.mxu1 %v769_v63 }
 0x33b   :  { %1450 = vmatpush3.msra.mxu1 %v769_v63 }
 0x33c   :  { %1435 = vmatprep.subr.mxu1 %v768_v0 }
 0x33d   :  { %1451 = vmatpush3.msra.mxu1 %v768_v0 }
 0x3de   :  { %v1342_v1 = vpop.f32.mrf.mxu1 }
 0x3df   :  { %v679_v2 = vadd.f32 %v1342_v1, %v431_v19  ;;  %v1972_v19 = vmax.f32 %v1760_v28, 0.0 }
 0x3e0   :  { %v673_v3 = vpop.f32.mrf.mxu1 }
 0x3e1   :  { %753 = vst [vmem:[#allocation11 + $0x8] sm:$0xff] %v679_v2  ;;  %v674_v4 = vadd.f32 %v673_v3, %v430_v18 }
 0x3e2   :  { %v1345_v5 = vpop.f32.mrf.mxu1 }
 0x3e3   :  { %752 = vst [vmem:[#allocation11] sm:$0xff] %v674_v4  ;;  %v689_v6 = vadd.f32 %v1345_v5, %v433_v23  ;;  %1396 = vmatprep.mubr.f32.mxu0 %v674_v4 }
 0x3e4   :  { %v683_v7 = vpop.f32.mrf.mxu1  ;;  %1397 = vmatmul.mubr.f32.vlgmr.msra.gmra.mxu0 %v679_v2 }
 0x3e5   :  { %755 = vst [vmem:[#allocation11 + $0x18] sm:$0xff] %v689_v6  ;;  %v684_v8 = vadd.f32 %v683_v7, %v432_v22  ;;  %v1973_v22 = vmax.f32 %v1764_v29, 0.0 }
 0x3e6   :  { %v1348_v9 = vpop.f32.mrf.mxu1 }
 0x3e7   :  { %754 = vst [vmem:[#allocation11 + $0x10] sm:$0xff] %v684_v8  ;;  %v699_v11 = vadd.f32 %v1348_v9, %v1970_v10  ;;  %1399 = vmatprep.mubr.f32.mxu0 %v684_v8 }
 0x3e8   :  { %v693_v12 = vpop.f32.mrf.mxu1  ;;  %1400 = vmatmul.mubr.f32.gmra.mxu0 %v689_v6 }
 0x3e9   :  { %757 = vst [vmem:[#allocation11 + $0x28] sm:$0xff] %v699_v11  ;;  %v694_v17 = vadd.f32 %v693_v12, %v1971_v16 }
 0x3ea   :  { %v1351_v18 = vpop.f32.mrf.mxu1 }
 0x3eb   :  { %756 = vst [vmem:[#allocation11 + $0x20] sm:$0xff] %v694_v17  ;;  %v709_v20 = vadd.f32 %v1351_v18, %v1972_v19  ;;  %1402 = vmatprep.mubr.f32.mxu0 %v694_v17 }
 0x3ec   :  { %v703_v21 = vpop.f32.mrf.mxu1  ;;  %1403 = vmatmul.mubr.f32.gmra.mxu0 %v699_v11 }
 0x3ed   :  { %759 = vst [vmem:[#allocation11 + $0x38] sm:$0xff] %v709_v20  ;;  %v704_v23 = vadd.f32 %v703_v21, %v1973_v22 }
 0x3ee   :  { %v1354_v24 = vpop.f32.mrf.mxu1 }
 0x3ef   :  { %758 = vst [vmem:[#allocation11 + $0x30] sm:$0xff] %v704_v23  ;;  %v719_v27 = vadd.f32 %v1354_v24, %v1974_v26  ;;  %1405 = vmatprep.mubr.f32.mxu0 %v704_v23 }
 0x3f0   :  { %v713_v25 = vpop.f32.mrf.mxu1  ;;  %1406 = vmatmul.mubr.f32.gmra.mxu0 %v709_v20 }
 0x3f1   :  { %761 = vst [vmem:[#allocation11 + $0x48] sm:$0xff] %v719_v27  ;;  %v714_v28 = vadd.f32 %v713_v25, %v1975_v30 }
 0x3f2   :  { %v1357_v31 = vpop.f32.mrf.mxu1 }
 0x3f3   :  { %760 = vst [vmem:[#allocation11 + $0x40] sm:$0xff] %v714_v28  ;;  %v729_v35 = vadd.f32 %v1357_v31, %v1976_v34  ;;  %1408 = vmatprep.mubr.f32.mxu1 %v714_v28 }
 0x3f4   :  { %v723_v29 = vpop.f32.mrf.mxu1  ;;  %1409 = vmatmul.mubr.f32.vlgmr.msra.gmra.mxu1 %v719_v27 }
 0x3f5   :  { %763 = vst [vmem:[#allocation11 + $0x58] sm:$0xff] %v729_v35  ;;  %v724_v32 = vadd.f32 %v723_v29, %v1977_v38 }
 0x3f6   :  { %v1360_v39 = vpop.f32.mrf.mxu1 }
 0x3f7   :  { %762 = vst [vmem:[#allocation11 + $0x50] sm:$0xff] %v724_v32  ;;  %v739_v43 = vadd.f32 %v1360_v39, %v1978_v42  ;;  %1411 = vmatprep.mubr.f32.mxu1 %v724_v32 }
 0x3f8   :  { %v733_v33 = vpop.f32.mrf.mxu1  ;;  %1412 = vmatmul.mubr.f32.gmra.mxu1 %v729_v35 }
 0x3f9   :  { %765 = vst [vmem:[#allocation11 + $0x68] sm:$0xff] %v739_v43  ;;  %v734_v36 = vadd.f32 %v733_v33, %v1979_v46 }
 0x3fa   :  { %v1363_v47 = vpop.f32.mrf.mxu1 }
 0x3fb   :  { %764 = vst [vmem:[#allocation11 + $0x60] sm:$0xff] %v734_v36  ;;  %v749_v49 = vadd.f32 %v1363_v47, %v1980_v48  ;;  %1414 = vmatprep.mubr.f32.mxu1 %v734_v36 }
 0x3fc   :  { %v743_v37 = vpop.f32.mrf.mxu1  ;;  %1415 = vmatmul.mubr.f32.gmra.mxu1 %v739_v43 }
 0x3fd   :  { %767 = vst [vmem:[#allocation11 + $0x78] sm:$0xff] %v749_v49  ;;  %v744_v40 = vadd.f32 %v743_v37, %v1981_v50 }
 0x3ff   :  { %766 = vst [vmem:[#allocation11 + $0x70] sm:$0xff] %v744_v40  ;;  %1417 = vmatprep.mubr.f32.mxu1 %v744_v40 }
 0x400   :  { %1418 = vmatmul.mubr.f32.gmra.mxu1 %v749_v49 }
 0x401   :  { %1572 = shalt.err (!%p1569_p1)
}
 0x402   :  { %956 = dma.vmem_to_hbm [thread:$0]  %s951_s4, 2048, %s1956_s5, [#allocation4], %s1613_s26, %s1613_s26, %s1614_s27  }
 0x403   :  { %s1619_s5 = smov [#allocation12]  }
 0x404   :  { %s962_s24 = sshll.u32 %s1619_s5, 4  ;;  %s963_s24 = int_to_ptr.vmem [resolvable:$true] %s962_s24 }
 0x405   :  { %s1581_s25 = scalar_lea.vmem %s963_s24, 2048  ;;  %p1586_p3 = scmp.lt.s32.totalorder %s963_s24, %s963_s24 }
 0x406   :  { %p1582_p2 = scmp.ne.s32.totalorder %s963_s24, %s1581_s25  ;;  %p1587_p4 = scmp.lt.s32.totalorder %s1581_s25, %s1581_s25 }
 0x408   :  { %p1588_p5 = por %p1587_p4, %p1586_p3 }
 0x40a   :  { %p1589_p6 = pnand %p1588_p5, %p1582_p2 }
 0x4a4   :  { %v1398_v41 = vpop.f32.mrf.mxu0 }
 0x4a5   :  { %930 = vst [vmem:[#allocation12 + $0x8] sm:$0xff] %v1398_v41 }
 0x4a6   :  { %v850_v44 = vpop.f32.mrf.mxu0 }
 0x4a7   :  { %929 = vst [vmem:[#allocation12] sm:$0xff] %v850_v44 }
 0x4a8   :  { %v1401_v45 = vpop.f32.mrf.mxu0 }
 0x4a9   :  { %932 = vst [vmem:[#allocation12 + $0x18] sm:$0xff] %v1401_v45 }
 0x4aa   :  { %v860_v51 = vpop.f32.mrf.mxu0 }
 0x4ab   :  { %931 = vst [vmem:[#allocation12 + $0x10] sm:$0xff] %v860_v51 }
 0x4ac   :  { %v1404_v52 = vpop.f32.mrf.mxu0 }
 0x4ad   :  { %934 = vst [vmem:[#allocation12 + $0x28] sm:$0xff] %v1404_v52 }
 0x4ae   :  { %v870_v53 = vpop.f32.mrf.mxu0 }
 0x4af   :  { %933 = vst [vmem:[#allocation12 + $0x20] sm:$0xff] %v870_v53 }
 0x4b0   :  { %v1407_v54 = vpop.f32.mrf.mxu0 }
 0x4b1   :  { %936 = vst [vmem:[#allocation12 + $0x38] sm:$0xff] %v1407_v54 }
 0x4b2   :  { %v880_v55 = vpop.f32.mrf.mxu0 }
 0x4b3   :  { %935 = vst [vmem:[#allocation12 + $0x30] sm:$0xff] %v880_v55 }
 0x4b4   :  { %v1410_v56 = vpop.f32.mrf.mxu1 }
 0x4b5   :  { %938 = vst [vmem:[#allocation12 + $0x48] sm:$0xff] %v1410_v56 }
 0x4b6   :  { %v890_v57 = vpop.f32.mrf.mxu1 }
 0x4b7   :  { %937 = vst [vmem:[#allocation12 + $0x40] sm:$0xff] %v890_v57 }
 0x4b8   :  { %v1413_v58 = vpop.f32.mrf.mxu1 }
 0x4b9   :  { %940 = vst [vmem:[#allocation12 + $0x58] sm:$0xff] %v1413_v58 }
 0x4ba   :  { %v900_v59 = vpop.f32.mrf.mxu1 }
 0x4bb   :  { %939 = vst [vmem:[#allocation12 + $0x50] sm:$0xff] %v900_v59 }
 0x4bc   :  { %v1416_v60 = vpop.f32.mrf.mxu1 }
 0x4bd   :  { %942 = vst [vmem:[#allocation12 + $0x68] sm:$0xff] %v1416_v60 }
 0x4be   :  { %v910_v61 = vpop.f32.mrf.mxu1 }
 0x4bf   :  { %941 = vst [vmem:[#allocation12 + $0x60] sm:$0xff] %v910_v61 }
 0x4c0   :  { %v1419_v13 = vpop.f32.mrf.mxu1 }
 0x4c1   :  { %944 = vst [vmem:[#allocation12 + $0x78] sm:$0xff] %v1419_v13 }
 0x4c2   :  { %v920_v14 = vpop.f32.mrf.mxu1 }
 0x4c3   :  { %943 = vst [vmem:[#allocation12 + $0x70] sm:$0xff] %v920_v14 }
 0x4c4   :  { %1592 = shalt.err (!%p1589_p6)
}
 0x4c5   :  { %968 = dma.vmem_to_hbm [thread:$0]  %s963_s24, 2048, %s1957_s6, [#allocation13], %s1613_s26, %s1613_s26, %s1614_s27  }
 0x4c6   :  { %1607 = dma.done.wait [#allocation4], 2048  }
 0x4c7   :  { %1608 = vsyncadd [#allocation4], 4294965248 }
 0x4c8   :  { %1609 = dma.done.wait [#allocation13], 2048  }
 0x4c9   :  { %1610 = vsyncadd [#allocation13], 4294965248 }
 0x4ca   :  { %975 = vsyncpa [#allocation3], 1 }
 0x4cb   :  { %976 = vsyncpa [#allocation6], 1 }
 0x4cc   :  { %977 = vsyncpa [#allocation9], 1 }
 0x4cd   :  { %978 = vsyncpa [#allocation4], 1 }
 0x4ce   :  { %979 = vsyncpa [#allocation13], 1 }

</bundles_post_ra>
